<compile_context>
chip_gen: v6e
topology: v6e:2x2x1
jax: 0.10.0
libtpu: 0.0.40
codegen_flags: <defaults>
</compile_context>

<pallas_src>
import functools

import jax
import jax.numpy as jnp
from jax.experimental import pallas as pl
from jax.experimental.pallas import tpu as pltpu


# ----------------------------- Pallas kernel --------------------------------

def _qmf_kernel(img_ref, enc_w_ref, w1_ref, w2_ref, bias_ref, out_ref,
                *, d2, h2, nc, out_w):
  """Fused RGB+depth QMF forward.

  img_ref   : (B, 2C, HW)   rgb channels 0:C, depth channels C:2C
  enc_w_ref : (2C, 2D)      block-diag(enc_w_rgb, enc_w_depth)
  w1_ref    : (2D, 2H1)     block-diag(w1_rgb, w1_depth)
  w2_ref    : (2H1, 2NC)    block-diag(w2_rgb, w2_depth)
  bias_ref  : (1, 2D+2H1+2NC)  [enc_b_r|enc_b_d|b1_r|b1_d|b2_r|b2_d]
  out_ref   : (B, out_w)    [fused(NC) | rgb_out(NC) | depth_out(NC)
                             | rgb_conf(1) | depth_conf(1) | zero pad]
  """
  f32 = jnp.float32

  # Stand-in ImageEncoder pooling for BOTH modalities at once:
  # global average pool over the spatial (lane) axis -> (B, 2C).
  pooled = jnp.mean(img_ref[...].astype(f32), axis=-1)

  # Packed biases (static lane slices of the VMEM ref; 2D and 2D+2H1 are
  # multiples of 128 for the config used here, so slices are lane-aligned).
  enc_b = bias_ref[:, 0:d2]                       # (1, 2D)
  b1 = bias_ref[:, d2:d2 + h2]                    # (1, 2H1)
  b2 = bias_ref[:, d2 + h2:d2 + h2 + 2 * nc]      # (1, 2NC)

  # Stand-in encoder linear projection (both modalities, block-diag weights).
  feat = jnp.dot(pooled, enc_w_ref[...], preferred_element_type=f32) + enc_b

  # clf_rgb / clf_depth: Linear -> ReLU -> (Dropout=identity) -> Linear,
  # fused into single wide MXU matmuls via the block-diagonal packing.
  h = jnp.maximum(
      jnp.dot(feat, w1_ref[...], preferred_element_type=f32) + b1, 0.0)
  out2 = jnp.dot(h, w2_ref[...], preferred_element_type=f32) + b2   # (B, 2NC)

  rgb_out = out2[:, :nc]
  dep_out = out2[:, nc:]

  def _logsumexp(x):
    m = jnp.max(x, axis=-1, keepdims=True)
    return m + jnp.log(jnp.sum(jnp.exp(x - m), axis=-1, keepdims=True))

  # energy = -logsumexp(out);  conf = -0.1 * energy = 0.1 * logsumexp(out)
  rgb_conf = 0.1 * _logsumexp(rgb_out)            # (B, 1)
  dep_conf = 0.1 * _logsumexp(dep_out)            # (B, 1)

  fused = dep_out * dep_conf + rgb_out * rgb_conf  # (B, NC)

  # Assemble one lane-dense output slab and store it with a single unmasked
  # store.  The scalar confidences go to lanes 0/1 of the tail via a select
  # (avoids 1-lane-wide concatenations at unaligned offsets).
  b = fused.shape[0]
  tail_w = out_w - 3 * nc
  lane = jax.lax.broadcasted_iota(jnp.int32, (b, tail_w), 1)
  tail = jnp.where(lane == 0, rgb_conf,
                   jnp.where(lane == 1, dep_conf, 0.0))              # (B, tail_w)
  out_ref[...] = jnp.concatenate([fused, rgb_out, dep_out, tail], axis=-1)


# ------------------------------ wrapper --------------------------------------

def _block_diag(a, b):
  ra, ca = a.shape
  rb, cb = b.shape
  top = jnp.concatenate([a, jnp.zeros((ra, cb), a.dtype)], axis=1)
  bot = jnp.concatenate([jnp.zeros((rb, ca), b.dtype), b], axis=1)
  return jnp.concatenate([top, bot], axis=0)


@jax.jit
def qmf_forward(rgb_img, depth_img, params):
  """rgb_img/depth_img: (B, C, H, W) float32 (PyTorch NCHW).  Returns
  (depth_rgb_out, rgb_out, depth_out, rgb_conf, depth_conf)."""
  B, C, H, W = rgb_img.shape
  HW = H * W

  # One stacked image operand: (B, 2C, HW); 2C=8 packs the sublane densely.
  imgs = jnp.concatenate(
      [rgb_img.reshape(B, C, HW), depth_img.reshape(B, C, HW)], axis=1)

  D = params["enc_w_r"].shape[1]
  H1 = params["w1_r"].shape[1]
  NC = params["w2_r"].shape[1]
  D2, H2 = 2 * D, 2 * H1
  OUT_W = 128                       # lane-dense output slab
  assert OUT_W >= 3 * NC + 2

  # Trace-time weight packing (block-diagonal) and bias concatenation; these
  # are cheap XLA ops outside the kernel and are constant-folded under jit.
  enc_w = _block_diag(params["enc_w_r"], params["enc_w_d"])        # (2C, 2D)
  w1 = _block_diag(params["w1_r"], params["w1_d"])                 # (2D, 2H1)
  w2 = _block_diag(params["w2_r"], params["w2_d"])                 # (2H1, 2NC)
  bias = jnp.concatenate(
      [params["enc_b_r"], params["enc_b_d"],
       params["b1_r"], params["b1_d"],
       params["b2_r"], params["b2_d"]], axis=1)                    # (1, 2D+2H1+2NC)

  flops = 2 * B * (2 * C * D2 + D2 * H2 + H2 * 2 * NC) + B * 2 * C * HW
  transcendentals = 2 * B * NC + 2 * B
  bytes_accessed = 4 * (imgs.size + enc_w.size + w1.size + w2.size
                        + bias.size + B * OUT_W)

  kernel = functools.partial(_qmf_kernel, d2=D2, h2=H2, nc=NC, out_w=OUT_W)
  vmem_spec = pl.BlockSpec(memory_space=pltpu.MemorySpace.VMEM)

  # Whole problem fits in VMEM -> single invocation, no grid.
  # (If B ever grows large, add a grid over B with
  #  dimension_semantics=("parallel",) to shard across TCs on v7x.)
  slab = pl.pallas_call(
      kernel,
      out_shape=jax.ShapeDtypeStruct((B, OUT_W), jnp.float32),
      in_specs=[vmem_spec] * 5,
      out_specs=vmem_spec,
      cost_estimate=pl.CostEstimate(flops=flops,
                                    transcendentals=transcendentals,
                                    bytes_accessed=bytes_accessed),
  )(imgs, enc_w, w1, w2, bias)

  fused = slab[:, 0:NC]
  rgb_out = slab[:, NC:2 * NC]
  dep_out = slab[:, 2 * NC:3 * NC]
  rgb_conf = slab[:, 3 * NC:3 * NC + 1]
  dep_conf = slab[:, 3 * NC + 1:3 * NC + 2]
  return fused, rgb_out, dep_out, rgb_conf, dep_conf


# --------------------------- param construction ------------------------------

def make_params(key, *, channels, img_hidden_sz, num_image_embeds,
                hidden, n_classes):
  """Deterministic synthetic parameters.  Linear weights are stored as
  (in_features, out_features) so the kernel does x @ W + b."""
  D = img_hidden_sz * num_image_embeds
  H1 = hidden[0]
  ks = jax.random.split(key, 12)
  s = 0.1
  return {
      "enc_w_r": s * jax.random.normal(ks[0], (channels, D), jnp.float32),
      "enc_b_r": s * jax.random.normal(ks[1], (1, D), jnp.float32),
      "enc_w_d": s * jax.random.normal(ks[2], (channels, D), jnp.float32),
      "enc_b_d": s * jax.random.normal(ks[3], (1, D), jnp.float32),
      "w1_r": s * jax.random.normal(ks[4], (D, H1), jnp.float32),
      "b1_r": s * jax.random.normal(ks[5], (1, H1), jnp.float32),
      "w2_r": s * jax.random.normal(ks[6], (H1, n_classes), jnp.float32),
      "b2_r": s * jax.random.normal(ks[7], (1, n_classes), jnp.float32),
      "w1_d": s * jax.random.normal(ks[8], (D, H1), jnp.float32),
      "b1_d": s * jax.random.normal(ks[9], (1, H1), jnp.float32),
      "w2_d": s * jax.random.normal(ks[10], (H1, n_classes), jnp.float32),
      "b2_d": s * jax.random.normal(ks[11], (1, n_classes), jnp.float32),
  }


# ----------------------------- pure-JAX reference ----------------------------

def qmf_reference(rgb_img, depth_img, p):
  B, C, H, W = rgb_img.shape
  rgb_pool = jnp.mean(rgb_img.reshape(B, C, H * W), axis=-1)
  dep_pool = jnp.mean(depth_img.reshape(B, C, H * W), axis=-1)
  rgb_feat = rgb_pool @ p["enc_w_r"] + p["enc_b_r"]
  dep_feat = dep_pool @ p["enc_w_d"] + p["enc_b_d"]
  rgb_out = jnp.maximum(rgb_feat @ p["w1_r"] + p["b1_r"], 0.) @ p["w2_r"] + p["b2_r"]
  dep_out = jnp.maximum(dep_feat @ p["w1_d"] + p["b1_d"], 0.) @ p["w2_d"] + p["b2_d"]
  rgb_energy = -jax.scipy.special.logsumexp(rgb_out, axis=1)
  dep_energy = -jax.scipy.special.logsumexp(dep_out, axis=1)
  rgb_conf = -0.1 * rgb_energy.reshape(-1, 1)
  dep_conf = -0.1 * dep_energy.reshape(-1, 1)
  fused = dep_out * dep_conf + rgb_out * rgb_conf
  return fused, rgb_out, dep_out, rgb_conf, dep_conf


# ---------------------------------- main --------------------------------------

if __name__ == "__main__":
  # Small synthetic config (args): img_hidden_sz=32, num_image_embeds=4,
  # hidden=[64], n_classes=16, dropout (eval -> identity).
  B, C, H, W = 8, 4, 16, 16
  img_hidden_sz, num_image_embeds = 32, 4
  hidden, n_classes = [64], 16

  key = jax.random.PRNGKey(0)
  k_rgb, k_depth, k_params = jax.random.split(key, 3)
  rgb = jax.random.normal(k_rgb, (B, C, H, W), jnp.float32)
  depth = jax.random.normal(k_depth, (B, C, H, W), jnp.float32)
  params = make_params(k_params, channels=C, img_hidden_sz=img_hidden_sz,
                       num_image_embeds=num_image_embeds, hidden=hidden,
                       n_classes=n_classes)

  outs = jax.block_until_ready(qmf_forward(rgb, depth, params))

  refs = qmf_reference(rgb, depth, params)
  for o, r in zip(outs, refs):
    assert o.shape == r.shape, (o.shape, r.shape)
    err = float(jnp.max(jnp.abs(o - r)))
    assert err < 1e-4, err

  print("KERNEL_OK")
</pallas_src>

<mosaic_0001>
module attributes {stable_mosaic.version = 11 : i64} {
  func.func @_qmf_kernel(%arg0: memref<8x8x256xf32, #tpu.memory_space<vmem>>, %arg1: memref<8x256xf32, #tpu.memory_space<vmem>>, %arg2: memref<256x128xf32, #tpu.memory_space<vmem>>, %arg3: memref<128x32xf32, #tpu.memory_space<vmem>>, %arg4: memref<1x416xf32, #tpu.memory_space<vmem>>, %arg5: memref<8x128xf32, #tpu.memory_space<vmem>>) attributes {dimension_semantics = [], scalar_prefetch = 0 : i64, scratch_operands = 0 : i64, tpu.core_type = #tpu.core_type<tc>} {
    %c0 = arith.constant 0 : index
    %c0_0 = arith.constant 0 : index
    %c0_1 = arith.constant 0 : index
    %0 = vector.load %arg0[%c0, %c0_0, %c0_1] : memref<8x8x256xf32, #tpu.memory_space<vmem>>, vector<8x8x256xf32>
    %cst = arith.constant dense<0.000000e+00> : vector<8x8xf32>
    %1 = vector.multi_reduction <add>, %0, %cst [2] : vector<8x8x256xf32> to vector<8x8xf32>
    %cst_2 = arith.constant 2.560000e+02 : f32
    %2 = vector.broadcast %cst_2 : f32 to vector<8x8xf32>
    %3 = arith.divf %1, %2 : vector<8x8xf32>
    %c0_3 = arith.constant 0 : index
    %c0_4 = arith.constant 0 : index
    %4 = vector.load %arg4[%c0_3, %c0_4] : memref<1x416xf32, #tpu.memory_space<vmem>>, vector<1x256xf32>
    %c0_5 = arith.constant 0 : index
    %c256 = arith.constant 256 : index
    %5 = vector.load %arg4[%c0_5, %c256] : memref<1x416xf32, #tpu.memory_space<vmem>>, vector<1x128xf32>
    %c0_6 = arith.constant 0 : index
    %c384 = arith.constant 384 : index
    %6 = vector.load %arg4[%c0_6, %c384] : memref<1x416xf32, #tpu.memory_space<vmem>>, vector<1x32xf32>
    %c0_7 = arith.constant 0 : index
    %c0_8 = arith.constant 0 : index
    %7 = vector.load %arg1[%c0_7, %c0_8] : memref<8x256xf32, #tpu.memory_space<vmem>>, vector<8x256xf32>
    %cst_9 = arith.constant dense<0.000000e+00> : vector<8x256xf32>
    %8 = tpu.matmul %3, %7, %cst_9 {dimension_numbers = #tpu.dot_dimension_numbers<[1], [0], [0], [1], [0, 0, 1, 1], [], []>} : vector<8x8xf32>, vector<8x256xf32>, vector<8x256xf32> -> vector<8x256xf32>
    %9 = vector.broadcast %4 : vector<1x256xf32> to vector<8x256xf32>
    %10 = arith.addf %8, %9 : vector<8x256xf32>
    %c0_10 = arith.constant 0 : index
    %c0_11 = arith.constant 0 : index
    %11 = vector.load %arg2[%c0_10, %c0_11] : memref<256x128xf32, #tpu.memory_space<vmem>>, vector<256x128xf32>
    %cst_12 = arith.constant dense<0.000000e+00> : vector<8x128xf32>
    %12 = tpu.matmul %10, %11, %cst_12 {dimension_numbers = #tpu.dot_dimension_numbers<[1], [0], [0], [1], [0, 0, 1, 1], [], []>} : vector<8x256xf32>, vector<256x128xf32>, vector<8x128xf32> -> vector<8x128xf32>
    %13 = vector.broadcast %5 : vector<1x128xf32> to vector<8x128xf32>
    %14 = arith.addf %12, %13 : vector<8x128xf32>
    %cst_13 = arith.constant 0.000000e+00 : f32
    %15 = vector.broadcast %cst_13 : f32 to vector<8x128xf32>
    %16 = arith.maximumf %14, %15 : vector<8x128xf32>
    %c0_14 = arith.constant 0 : index
    %c0_15 = arith.constant 0 : index
    %17 = vector.load %arg3[%c0_14, %c0_15] : memref<128x32xf32, #tpu.memory_space<vmem>>, vector<128x32xf32>
    %cst_16 = arith.constant dense<0.000000e+00> : vector<8x32xf32>
    %18 = tpu.matmul %16, %17, %cst_16 {dimension_numbers = #tpu.dot_dimension_numbers<[1], [0], [0], [1], [0, 0, 1, 1], [], []>} : vector<8x128xf32>, vector<128x32xf32>, vector<8x32xf32> -> vector<8x32xf32>
    %19 = vector.broadcast %6 : vector<1x32xf32> to vector<8x32xf32>
    %20 = arith.addf %18, %19 : vector<8x32xf32>
    %21 = vector.extract_strided_slice %20 {offsets = [0, 0], sizes = [8, 16], strides = [1, 1]} : vector<8x32xf32> to vector<8x16xf32>
    %22 = vector.extract_strided_slice %20 {offsets = [0, 16], sizes = [8, 16], strides = [1, 1]} : vector<8x32xf32> to vector<8x16xf32>
    %cst_17 = arith.constant dense<0xFF800000> : vector<8xf32>
    %23 = vector.multi_reduction <maximumf>, %21, %cst_17 [1] : vector<8x16xf32> to vector<8xf32>
    %24 = vector.shape_cast %23 : vector<8xf32> to vector<8x1xf32>
    %25 = vector.broadcast %24 : vector<8x1xf32> to vector<8x16xf32>
    %26 = arith.subf %21, %25 : vector<8x16xf32>
    %27 = math.exp %26 : vector<8x16xf32>
    %cst_18 = arith.constant dense<0.000000e+00> : vector<8xf32>
    %28 = vector.multi_reduction <add>, %27, %cst_18 [1] : vector<8x16xf32> to vector<8xf32>
    %29 = vector.shape_cast %28 : vector<8xf32> to vector<8x1xf32>
    %30 = math.log %29 : vector<8x1xf32>
    %31 = arith.addf %24, %30 : vector<8x1xf32>
    %cst_19 = arith.constant 1.000000e-01 : f32
    %32 = vector.broadcast %cst_19 : f32 to vector<8x1xf32>
    %33 = arith.mulf %32, %31 : vector<8x1xf32>
    %cst_20 = arith.constant dense<0xFF800000> : vector<8xf32>
    %34 = vector.multi_reduction <maximumf>, %22, %cst_20 [1] : vector<8x16xf32> to vector<8xf32>
    %35 = vector.shape_cast %34 : vector<8xf32> to vector<8x1xf32>
    %36 = vector.broadcast %35 : vector<8x1xf32> to vector<8x16xf32>
    %37 = arith.subf %22, %36 : vector<8x16xf32>
    %38 = math.exp %37 : vector<8x16xf32>
    %cst_21 = arith.constant dense<0.000000e+00> : vector<8xf32>
    %39 = vector.multi_reduction <add>, %38, %cst_21 [1] : vector<8x16xf32> to vector<8xf32>
    %40 = vector.shape_cast %39 : vector<8xf32> to vector<8x1xf32>
    %41 = math.log %40 : vector<8x1xf32>
    %42 = arith.addf %35, %41 : vector<8x1xf32>
    %cst_22 = arith.constant 1.000000e-01 : f32
    %43 = vector.broadcast %cst_22 : f32 to vector<8x1xf32>
    %44 = arith.mulf %43, %42 : vector<8x1xf32>
    %45 = vector.broadcast %44 : vector<8x1xf32> to vector<8x16xf32>
    %46 = arith.mulf %22, %45 : vector<8x16xf32>
    %47 = vector.broadcast %33 : vector<8x1xf32> to vector<8x16xf32>
    %48 = arith.mulf %21, %47 : vector<8x16xf32>
    %49 = arith.addf %46, %48 : vector<8x16xf32>
    %50 = tpu.iota {dimensions = array<i32: 1>} : vector<8x80xi32>
    %c0_i32 = arith.constant 0 : i32
    %51 = vector.broadcast %c0_i32 : i32 to vector<8x80xi32>
    %52 = arith.cmpi eq, %50, %51 : vector<8x80xi32>
    %c1_i32 = arith.constant 1 : i32
    %53 = vector.broadcast %c1_i32 : i32 to vector<8x80xi32>
    %54 = arith.cmpi eq, %50, %53 : vector<8x80xi32>
    %cst_23 = arith.constant 0.000000e+00 : f32
    %55 = vector.shape_cast %44 : vector<8x1xf32> to vector<8x1xf32>
    %56 = vector.broadcast %55 : vector<8x1xf32> to vector<8x80xf32>
    %57 = vector.broadcast %cst_23 : f32 to vector<8x80xf32>
    %58 = arith.select %54, %56, %57 : vector<8x80xi1>, vector<8x80xf32>
    %59 = vector.shape_cast %33 : vector<8x1xf32> to vector<8x1xf32>
    %60 = vector.broadcast %59 : vector<8x1xf32> to vector<8x80xf32>
    %61 = arith.select %52, %60, %58 : vector<8x80xi1>, vector<8x80xf32>
    %62 = tpu.concatenate %49, %21, %22, %61 in 1 : vector<8x16xf32>, vector<8x16xf32>, vector<8x16xf32>, vector<8x80xf32> -> vector<8x128xf32>
    %c0_24 = arith.constant 0 : index
    %c0_25 = arith.constant 0 : index
    %63 = vector.load %arg5[%c0_24, %c0_25] : memref<8x128xf32, #tpu.memory_space<vmem>>, vector<8x128xf32>
    tpu.vector_store %arg5[%c0_24, %c0_25], %62 {strides = array<i32>} : memref<8x128xf32, #tpu.memory_space<vmem>>, vector<8x128xf32>,
    return
  }
}

</mosaic_0001>

<bundles_post_ra>
// kernel: qmf_forward.1
= control target key start
LH: loop header
LB: loop body
LE: loop exit
PB: predicated region body
PF: predicated region fallthrough
CT: control target
= control target key end

     0   :  { %v584_v26 = vmov 0.0   ;;  %v75_v53 = vlaneseq  ;;  %vm127_vm0 = vcmask 1041409   ;;  %vm129_vm1 = vcmask 1042434   ;;  %s588_s21 = smov 48   ;;  %s861_s0 = inlined_call_operand.vmem [shape: f32[8,8,256], index: 0, kind: input, shape index: {}]   ;;  %s862_s1 = inlined_call_operand.vmem [shape: f32[8,256], index: 1, kind: input, shape index: {}]   ;;  %s863_s2 = inlined_call_operand.vmem [shape: f32[256,128], index: 2, kind: input, shape index: {}]   ;;  %s864_s3 = inlined_call_operand.vmem [shape: f32[128,32], index: 3, kind: input, shape index: {}]   ;;  %s865_s4 = inlined_call_operand.vmem [shape: f32[1,416], index: 4, kind: input, shape index: {}]   ;;  %s866_s5 = inlined_call_operand.vmem [shape: f32[8,128], index: 5, kind: output, shape index: {}]  }
   0x1   :  { %v20_v0 = vld [vmem:[%s861_s0] sm:$0xff]  ;;  %v21_v1 = vld [vmem:[%s861_s0 + $0x8] sm:$0xff]  ;;  %v22_v5 = vld [vmem:[%s861_s0 + $0x10] sm:$0xff]  ;;  %208 = vmatprep.mubr.f32.mxu0 %v584_v26  ;;  %vm131_vm2 = vcmask 1043459   ;;  %vm133_vm3 = vcmask 1044484   ;;  %vm135_vm4 = vcmask 1045509  }
   0x2   :  { %v24_v2 = vld [vmem:[%s861_s0 + $0x20] sm:$0xff]  ;;  %v36_v3 = vadd.f32 %v21_v1, %v20_v0  ;;  %v25_v4 = vld [vmem:[%s861_s0 + $0x28] sm:$0xff]  ;;  %v23_v6 = vld [vmem:[%s861_s0 + $0x18] sm:$0xff]  ;;  %v753_v54 = vshrl.u32 %v75_v53, 7  ;;  %v755_v55 = vand.u32 127, %v75_v53  ;;  %vm137_vm5 = vcmask 1046534  }
   0x3   :  { %v42_v7 = vadd.f32 %v25_v4, %v24_v2  ;;  %v26_v8 = vld [vmem:[%s861_s0 + $0x30] sm:$0xff]  ;;  %v27_v9 = vld [vmem:[%s861_s0 + $0x38] sm:$0xff]  ;;  %v39_v10 = vadd.f32 %v23_v6, %v22_v5  ;;  %v28_v12 = vld [vmem:[%s861_s0 + $0x40] sm:$0xff]  ;;  %vm139_vm6 = vcmask 1047559   ;;  %vm141_vm7 = vcmask 64512  }
   0x4   :  { %37 = vadd.xlane.f32.xlu0 %v36_v3  ;;  %v45_v11 = vadd.f32 %v27_v9, %v26_v8  ;;  %v29_v13 = vld [vmem:[%s861_s0 + $0x48] sm:$0xff]  ;;  %v30_v14 = vld [vmem:[%s861_s0 + $0x50] sm:$0xff]  ;;  %v31_v15 = vld [vmem:[%s861_s0 + $0x58] sm:$0xff]  ;;  %v97_v58 = vsub.s32 %v755_v55, %v753_v54  ;;  %vm585_vm8 = vmmov 0   ;;  %vm430_vm9 = vcmask 261248  }
   0x5   :  { %43 = vadd.xlane.f32.xlu1 %v42_v7  ;;  %v48_v16 = vadd.f32 %v29_v13, %v28_v12  ;;  %v51_v17 = vadd.f32 %v31_v15, %v30_v14  ;;  %v32_v18 = vld [vmem:[%s861_s0 + $0x60] sm:$0xff]  ;;  %v33_v19 = vld [vmem:[%s861_s0 + $0x68] sm:$0xff]  ;;  %v34_v20 = vld [vmem:[%s861_s0 + $0x70] sm:$0xff]  ;;  %vm416_vm10 = vcmask 130048   ;;  %vm456_vm11 = vcmp.eq.s32.totalorder %v755_v55, 1 }
   0x6   :  { %v35_v21 = vld [vmem:[%s861_s0 + $0x78] sm:$0xff]  ;;  %v54_v22 = vadd.f32 %v33_v19, %v32_v18  ;;  %v73_v24 = vld [vmem:[%s862_s1 + $0x8] sm:$0xff]  ;;  %v72_v25 = vld [vmem:[%s862_s1] sm:$0xff]  ;;  %vm455_vm12 = vcmp.eq.s32.totalorder %v755_v55, 0  ;;  %vm472_vm13 = vcmask 261120   ;;  %vm474_vm14 = vcmask 392192  }
   0x7   :  { %v57_v23 = vadd.f32 %v35_v21, %v34_v20  ;;  %174 = vmatprep.subr.mxu0 %v73_v24  ;;  %v246_v27 = vld [vmem:[%s863_s2 + $0xf8] sm:$0xff]  ;;  %v245_v29 = vld [vmem:[%s863_s2 + $0xf0] sm:$0xff]  ;;  %v244_v31 = vld [vmem:[%s863_s2 + $0xe8] sm:$0xff] }
   0x8   :  { %40 = vadd.xlane.f32.xlu0 %v39_v10  ;;  %175 = vmatpush1.msra.mxu0 %v72_v25  ;;  %v230_v28 = vld [vmem:[%s863_s2 + $0x78] sm:$0xff]  ;;  %v229_v30 = vld [vmem:[%s863_s2 + $0x70] sm:$0xff]  ;;  %v228_v32 = vld [vmem:[%s863_s2 + $0x68] sm:$0xff] }
   0x9   :  { %46 = vadd.xlane.f32.xlu1 %v45_v11  ;;  %536 = vmatprep.subr.mxu0 %v584_v26  ;;  %v243_v33 = vld [vmem:[%s863_s2 + $0xe0] sm:$0xff]  ;;  %v242_v35 = vld [vmem:[%s863_s2 + $0xd8] sm:$0xff]  ;;  %v241_v37 = vld [vmem:[%s863_s2 + $0xd0] sm:$0xff] }
   0xa   :  { %484 = vmatprep.subr.mxu1 %v246_v27  ;;  %v227_v34 = vld [vmem:[%s863_s2 + $0x60] sm:$0xff]  ;;  %v226_v36 = vld [vmem:[%s863_s2 + $0x58] sm:$0xff]  ;;  %v225_v38 = vld [vmem:[%s863_s2 + $0x50] sm:$0xff] }
   0xb   :  { %485 = vmatpush3.msra.mxu1 %v230_v28  ;;  %v240_v39 = vld [vmem:[%s863_s2 + $0xc8] sm:$0xff]  ;;  %v239_v41 = vld [vmem:[%s863_s2 + $0xc0] sm:$0xff]  ;;  %v238_v43 = vld [vmem:[%s863_s2 + $0xb8] sm:$0xff] }
   0xc   :  { %49 = vadd.xlane.f32.xlu0 %v48_v16  ;;  %486 = vmatprep.subr.mxu1 %v245_v29  ;;  %v224_v40 = vld [vmem:[%s863_s2 + $0x48] sm:$0xff]  ;;  %v223_v42 = vld [vmem:[%s863_s2 + $0x40] sm:$0xff]  ;;  %v222_v44 = vld [vmem:[%s863_s2 + $0x38] sm:$0xff] }
   0xd   :  { %52 = vadd.xlane.f32.xlu1 %v51_v17  ;;  %487 = vmatpush3.msra.mxu1 %v229_v30  ;;  %v237_v45 = vld [vmem:[%s863_s2 + $0xb0] sm:$0xff]  ;;  %v236_v47 = vld [vmem:[%s863_s2 + $0xa8] sm:$0xff]  ;;  %v235_v49 = vld [vmem:[%s863_s2 + $0xa0] sm:$0xff] }
   0xe   :  { %488 = vmatprep.subr.mxu1 %v244_v31  ;;  %v221_v46 = vld [vmem:[%s863_s2 + $0x30] sm:$0xff]  ;;  %v220_v48 = vld [vmem:[%s863_s2 + $0x28] sm:$0xff]  ;;  %v219_v50 = vld [vmem:[%s863_s2 + $0x20] sm:$0xff] }
   0xf   :  { %489 = vmatpush3.msra.mxu1 %v228_v32  ;;  %v234_v51 = vld [vmem:[%s863_s2 + $0x98] sm:$0xff]  ;;  %v233_v24 = vld [vmem:[%s863_s2 + $0x90] sm:$0xff]  ;;  %v232_v27 = vld [vmem:[%s863_s2 + $0x88] sm:$0xff] }
  0x10   :  { %55 = vadd.xlane.f32.xlu0 %v54_v22  ;;  %490 = vmatprep.subr.mxu1 %v243_v33  ;;  %v218_v52 = vld [vmem:[%s863_s2 + $0x18] sm:$0xff]  ;;  %v217_v25 = vld [vmem:[%s863_s2 + $0x10] sm:$0xff]  ;;  %v216_v28 = vld [vmem:[%s863_s2 + $0x8] sm:$0xff] }
  0x11   :  { %58 = vadd.xlane.f32.xlu1 %v57_v23  ;;  %491 = vmatpush3.msra.mxu1 %v227_v34  ;;  %v231_v29 = vld [vmem:[%s863_s2 + $0x80] sm:$0xff]  ;;  %v339_v31 = vld [vmem:[%s864_s3 + $0x78] sm:$0xff]  ;;  %v338_v32 = vld [vmem:[%s864_s3 + $0x70] sm:$0xff] }
  0x12   :  { %492 = vmatprep.subr.mxu1 %v242_v35  ;;  %v215_v30 = vld [vmem:[%s863_s2] sm:$0xff]  ;;  %v337_v33 = vld [vmem:[%s864_s3 + $0x68] sm:$0xff]  ;;  %v335_v35 = vld [vmem:[%s864_s3 + $0x58] sm:$0xff] }
  0x13   :  { %493 = vmatpush3.msra.mxu1 %v226_v36  ;;  %v336_v34 = vld [vmem:[%s864_s3 + $0x60] sm:$0xff]  ;;  %v334_v36 = vld [vmem:[%s864_s3 + $0x50] sm:$0xff] }
  0x14   :  { %494 = vmatprep.subr.mxu1 %v241_v37  ;;  %v333_v37 = vld [vmem:[%s864_s3 + $0x48] sm:$0xff]  ;;  %v326_v53 = vld [vmem:[%s864_s3 + $0x10] sm:$0xff] }
  0x15   :  { %495 = vmatpush3.msra.mxu1 %v225_v38  ;;  %v332_v38 = vld [vmem:[%s864_s3 + $0x40] sm:$0xff] }
  0x16   :  { %496 = vmatprep.subr.mxu1 %v240_v39  ;;  %v331_v39 = vld [vmem:[%s864_s3 + $0x38] sm:$0xff] }
  0x17   :  { %497 = vmatpush3.msra.mxu1 %v224_v40  ;;  %v330_v40 = vld [vmem:[%s864_s3 + $0x30] sm:$0xff] }
  0x18   :  { %498 = vmatprep.subr.mxu1 %v239_v41  ;;  %v329_v41 = vld [vmem:[%s864_s3 + $0x28] sm:$0xff] }
  0x19   :  { %499 = vmatpush3.msra.mxu1 %v223_v42  ;;  %v81_v42 = vsub.s32 1, %v753_v54 }
  0x1a   :  { %500 = vmatprep.subr.mxu1 %v238_v43  ;;  %v77_v43 = vsub.s32 0, %v753_v54  ;;  %v325_v54 = vld [vmem:[%s864_s3 + $0x8] sm:$0xff] }
  0x1b   :  { %501 = vmatpush3.msra.mxu1 %v222_v44  ;;  %v69_v44 = vld [vmem:[%s865_s4] sm:$0x3] }
  0x1c   :  { %502 = vmatprep.subr.mxu1 %v237_v45  ;;  %v82_v45 = vrot.slane %v69_v44, %v81_v42 }
  0x1d   :  { %503 = vmatpush3.msra.mxu1 %v221_v46  ;;  %v78_v46 = vrot.slane %v69_v44, %v77_v43 }
  0x1e   :  { %504 = vmatprep.subr.mxu1 %v236_v47 }
  0x1f   :  { %505 = vmatpush3.msra.mxu1 %v220_v48 }
  0x20   :  { %506 = vmatprep.subr.mxu1 %v235_v49 }
  0x21   :  { %507 = vmatpush3.msra.mxu1 %v219_v50 }
  0x22   :  { %508 = vmatprep.subr.mxu1 %v234_v51  ;;  %v328_v51 = vld [vmem:[%s864_s3 + $0x20] sm:$0xff] }
  0x23   :  { %509 = vmatpush3.msra.mxu1 %v218_v52  ;;  %v327_v52 = vld [vmem:[%s864_s3 + $0x18] sm:$0xff] }
  0x24   :  { %510 = vmatprep.subr.mxu1 %v233_v24 }
  0x25   :  { %511 = vmatpush3.msra.mxu1 %v217_v25 }
  0x26   :  { %512 = vmatprep.subr.mxu1 %v232_v27 }
  0x27   :  { %513 = vmatpush3.msra.mxu1 %v216_v28 }
  0x28   :  { %514 = vmatprep.subr.mxu1 %v231_v29 }
  0x29   :  { %515 = vmatpush3.msra.mxu1 %v215_v30 }
  0x8d   :  { %v38_v56 = vpop.xlane.xlu0 %37 }
  0x8e   :  { %v44_v57 = vpop.xlane.xlu1 %43  ;;  %v61_v59 = vmul.f32 0.00390625, %v38_v56  ;;  %v324_v56 = vld [vmem:[%s864_s3] sm:$0xff]  ;;  %s586_s3 = smov 112  }
  0x8f   :  { %v63_v60 = vmul.f32 0.00390625, %v44_v57 }
  0x90   :  { %v98_v1 = vrot.slane %v61_v59, %v97_v58 }
  0x91   :  { %v41_v61 = vpop.xlane.xlu0 %40  ;;  %v106_v3 = vrot.slane %v63_v60, %v97_v58 }
  0x92   :  { %v62_v62 = vmul.f32 0.00390625, %v41_v61  ;;  %v47_v63 = vpop.xlane.xlu1 %46 }
  0x93   :  { %v64_v0 = vmul.f32 0.00390625, %v47_v63  ;;  %v483_v63 = vld [vmem:[%s865_s4 + $0x3] ss:$0 sm:$0xff] }
  0x94   :  { %v102_v2 = vrot.slane %v62_v62, %v97_v58 }
  0x95   :  { %v110_v4 = vrot.slane %v64_v0, %v97_v58  ;;  %v50_v5 = vpop.xlane.xlu0 %49 }
  0x96   :  { %v128_v6 = vsel %vm127_vm0, %v102_v2, %v98_v1  ;;  %v65_v7 = vmul.f32 0.00390625, %v50_v5  ;;  %v53_v8 = vpop.xlane.xlu1 %52 }
  0x97   :  { %v130_v9 = vsel %vm129_vm1, %v106_v3, %v128_v6  ;;  %v66_v10 = vmul.f32 0.00390625, %v53_v8 }
  0x98   :  { %v132_v11 = vsel %vm131_vm2, %v110_v4, %v130_v9  ;;  %v114_v12 = vrot.slane %v65_v7, %v97_v58 }
  0x99   :  { %v118_v13 = vrot.slane %v66_v10, %v97_v58  ;;  %v56_v14 = vpop.xlane.xlu0 %55 }
  0x9a   :  { %v134_v15 = vsel %vm133_vm3, %v114_v12, %v132_v11  ;;  %v67_v16 = vmul.f32 0.00390625, %v56_v14  ;;  %v59_v17 = vpop.xlane.xlu1 %58 }
  0x9b   :  { %v68_v18 = vmul.f32 0.00390625, %v59_v17  ;;  %v136_v20 = vsel %vm135_vm4, %v118_v13, %v134_v15 }
  0x9c   :  { %v122_v19 = vrot.slane %v67_v16, %v97_v58 }
  0x9d   :  { %v126_v21 = vrot.slane %v68_v18, %v97_v58  ;;  %v482_v58 = vld [vmem:[%s865_s4 + $0x2] ss:$0 sm:$0xff]  ;;  %s587_s4 = smov 16  }
  0x9e   :  { %v138_v22 = vsel %vm137_vm5, %v122_v19, %v136_v20 }
  0x9f   :  { %v140_v23 = vsel %vm139_vm6, %v126_v21, %v138_v22 }
  0xa0   :  { %481 = vmatmul.mubr.msk.f32.vlgmr.msra.gmra.mxu0 %vm141_vm7, %v140_v23 }
  0xa1   :  { %537 = vmatpush3.msra.mxu0 %v339_v31  ;;  %568 = vmatprep.mubr.msk.f32.mxu0 %vm585_vm8, %v584_v26 }
  0xa2   :  { %538 = vmatprep.subr.mxu0 %v584_v26 }
  0xa3   :  { %539 = vmatpush3.msra.mxu0 %v338_v32 }
  0xa4   :  { %540 = vmatprep.subr.mxu0 %v584_v26 }
  0xa5   :  { %541 = vmatpush3.msra.mxu0 %v337_v33 }
  0xa6   :  { %542 = vmatprep.subr.mxu0 %v584_v26 }
  0xa7   :  { %543 = vmatpush3.msra.mxu0 %v336_v34 }
  0xa8   :  { %544 = vmatprep.subr.mxu0 %v584_v26 }
  0xa9   :  { %545 = vmatpush3.msra.mxu0 %v335_v35 }
  0xaa   :  { %546 = vmatprep.subr.mxu0 %v584_v26 }
  0xab   :  { %547 = vmatpush3.msra.mxu0 %v334_v36 }
  0xac   :  { %548 = vmatprep.subr.mxu0 %v584_v26 }
  0xad   :  { %549 = vmatpush3.msra.mxu0 %v333_v37 }
  0xae   :  { %550 = vmatprep.subr.mxu0 %v584_v26 }
  0xaf   :  { %551 = vmatpush3.msra.mxu0 %v332_v38 }
  0xb0   :  { %552 = vmatprep.subr.mxu0 %v584_v26 }
  0xb1   :  { %553 = vmatpush3.msra.mxu0 %v331_v39 }
  0xb2   :  { %554 = vmatprep.subr.mxu0 %v584_v26 }
  0xb3   :  { %555 = vmatpush3.msra.mxu0 %v330_v40 }
  0xb4   :  { %556 = vmatprep.subr.mxu0 %v584_v26 }
  0xb5   :  { %557 = vmatpush3.msra.mxu0 %v329_v41 }
  0xb6   :  { %558 = vmatprep.subr.mxu0 %v584_v26 }
  0xb7   :  { %559 = vmatpush3.msra.mxu0 %v328_v51 }
  0xb8   :  { %560 = vmatprep.subr.mxu0 %v584_v26 }
  0xb9   :  { %561 = vmatpush3.msra.mxu0 %v327_v52 }
  0xba   :  { %562 = vmatprep.subr.mxu0 %v584_v26 }
  0xbb   :  { %563 = vmatpush3.msra.mxu0 %v326_v53 }
  0xbc   :  { %564 = vmatprep.subr.mxu0 %v584_v26 }
  0xbd   :  { %565 = vmatpush3.msra.mxu0 %v325_v54 }
  0xbe   :  { %566 = vmatprep.subr.mxu0 %v584_v26 }
  0xbf   :  { %567 = vmatpush3.msra.mxu0 %v324_v56 }
 0x160   :  { %v210_v47 = vpop.f32.mrf.mxu0 }
 0x161   :  { %v211_v50 = vadd.f32 %v210_v47, %v78_v46 }
 0x162   :  { %v212_v48 = vpop.f32.mrf.mxu0 }
 0x163   :  { %v213_v49 = vadd.f32 %v212_v48, %v82_v45 }
 0x165   :  { %317 = vmatprep.mubr.f32.mxu1 %v213_v49 }
 0x166   :  { %318 = vmatmul.mubr.f32.vlgmr.msra.gmra.mxu1 %v211_v50 }
 0x226   :  { %v516_v57 = vpop.f32.mrf.mxu1 }
 0x228   :  { %v517_v59 = vpop.f32.mrf.mxu1 }
 0x229   :  { %v518_v60 = vadd.f32 %v517_v59, %v516_v57 }
 0x22b   :  { %v320_v61 = vadd.f32 %v518_v60, %v482_v58 }
 0x22d   :  { %v323_v62 = vmax.f32 %v320_v61, 0.0 }
 0x22f   :  { %569 = vmatmul.mubr.f32.vlgmr.msra.gmra.mxu0 %v323_v62 }
 0x2ef   :  { %v412_v0 = vpop.f32.mrf.mxu0 }
 0x2f0   :  { %v413_v1 = vadd.f32 %v483_v63, %v412_v0 }
 0x2f1   :  { %v570_v2 = vpop.f32.mrf.mxu0 }
 0x2f2   :  { %v431_v26 = vsel %vm430_vm9, %v413_v1, -inf  ;;  %v417_v3 = vsel %vm416_vm10, %v413_v1, -inf }
 0x2f3   :  { %432 = vmax.xlane.f32.xlu1 %v431_v26  ;;  %418 = vmax.xlane.f32.xlu0 %v417_v3 }
 0x37c   :  { %v433_v4 = vpop.xlane.xlu1 %432  ;;  %v419_v5 = vpop.xlane.xlu0 %418 }
 0x37d   :  { %v434_v6 = vsub.f32 %v413_v1, %v433_v4  ;;  %v420_v7 = vsub.f32 %v413_v1, %v419_v5 }
 0x37f   :  { %v435_v8 = vmul.f32 1.442695, %v434_v6  ;;  %v421_v9 = vmul.f32 1.442695, %v420_v7 }
 0x381   :  { %576 = vpow2.f32 %v435_v8 }
 0x382   :  { %578 = vpow2.f32 %v421_v9 }
 0x38e   :  { %v577_v10 = vpop.eup %576 }
 0x38f   :  { %v579_v11 = vpop.eup %578  ;;  %438 = vrot.lane.b32.xlu0 %v577_v10, %s586_s3 }
 0x390   :  { %v423_v12 = vsel %vm416_vm10, %v579_v11, 0.0 }
 0x391   :  { %424 = vadd.xlane.f32.xlu1 %v423_v12 }
 0x401   :  { %v439_v13 = vpop.permute.xlu0 %438 }
 0x402   :  { %v441_v14 = vsel %vm416_vm10, %v439_v13, 0.0 }
 0x403   :  { %442 = vadd.xlane.f32.xlu1 %v441_v14 }
 0x41a   :  { %v425_v15 = vpop.xlane.xlu1 %424 }
 0x41b   :  { %580 = vlog2.f32 %v425_v15 }
 0x428   :  { %v581_v16 = vpop.eup %580 }
 0x429   :  { %v427_v17 = vmul.f32 0.6931472, %v581_v16 }
 0x42b   :  { %v428_v18 = vadd.f32 %v427_v17, %v419_v5 }
 0x42d   :  { %v429_v19 = vmul.f32 0.1, %v428_v18 }
 0x42f   :  { %v449_v20 = vmul.f32 %v429_v19, %v413_v1 }
 0x431   :  { %451 = vrot.lane.b32.xlu1 %v449_v20, %s587_s4 }
 0x435   :  { %464 = vrot.lane.b32.xlu1 %v413_v1, %s587_s4 }
 0x48c   :  { %v443_v21 = vpop.xlane.xlu1 %442 }
 0x48d   :  { %582 = vlog2.f32 %v443_v21 }
 0x49a   :  { %v583_v22 = vpop.eup %582 }
 0x49b   :  { %v445_v23 = vmul.f32 0.6931472, %v583_v22 }
 0x49d   :  { %v446_v24 = vadd.f32 %v445_v23, %v433_v4 }
 0x49f   :  { %v447_v25 = vmul.f32 0.1, %v446_v24 }
 0x4a1   :  { %v448_v27 = vmul.f32 %v447_v25, %v413_v1  ;;  %v457_v30 = vsel %vm456_vm11, %v447_v25, 0.0 }
 0x4a2   :  { %v458_v31 = vsel %vm455_vm12, %v429_v19, %v457_v30 }
 0x4a3   :  { %v452_v28 = vpop.permute.xlu1 %451 }
 0x4a4   :  { %v454_v29 = vadd.f32 %v452_v28, %v448_v27 }
 0x4a6   :  { %460 = vrot.lane.b32.xlu0 %v454_v29, %s586_s3 }
 0x4a7   :  { %v465_v32 = vpop.permute.xlu1 %464 }
 0x4aa   :  { %468 = vrot.lane.b32.xlu0 %v458_v31, %s588_s21 }
 0x518   :  { %v461_v33 = vpop.permute.xlu0 %460 }
 0x519   :  { %v471_v34 = vsel %vm416_vm10, %v461_v33, %v465_v32 }
 0x51a   :  { %v473_v36 = vsel %vm472_vm13, %v471_v34, %v465_v32 }
 0x51c   :  { %v469_v35 = vpop.permute.xlu0 %468 }
 0x51d   :  { %v475_v37 = vsel %vm474_vm14, %v473_v36, %v469_v35 }
 0x51e   :  { %476 = vst [vmem:[%s866_s5] sm:$0xff] %v475_v37 }

</bundles_post_ra>
